<compile_context>
chip_gen: v6e
topology: v6e:2x2x1
jax: 0.10.0
libtpu: 0.0.40
codegen_flags: <defaults>
</compile_context>

<pallas_src>
import functools

import jax
import jax.numpy as jnp
from jax.experimental import pallas as pl
from jax.experimental.pallas import tpu as pltpu

LRELU_SLOPE = 0.2                       # model_config.mrd.lReLU_slope (UnivNet default)
_VMEM_LIMIT = 64 * 1024 * 1024          # fits v7x's 64 MiB physical VMEM; fine on v5e/v6e


def _cdiv(a, b):
    return (a + b - 1) // b


def _round_up(a, b):
    return _cdiv(a, b) * b


# ---------------------------------------------------------------------------
# Spectrogram: |STFT| as one windowed-DFT matmul per block of TM frames.
# ---------------------------------------------------------------------------
def _stft_kernel(wav_ref, basis_ref, out_ref, *, TM, R, rem, EXTRA, F_pad):
    i = pl.program_id(1)
    start = pl.multiple_of(i * TM, TM)
    # [TM + EXTRA, hop]: hop-strided waveform rows covering all TM frames of
    # this block (in-kernel framing, no duplicated frame buffer in HBM).
    chunk = wav_ref[pl.ds(start, TM + EXTRA), :]
    parts = [chunk[s:s + TM, :] for s in range(R)]
    if rem:
        parts.append(chunk[R:R + TM, :rem])
    frames = jnp.concatenate(parts, axis=1)                      # [TM, n_fft]
    prod = jnp.dot(frames.astype(jnp.bfloat16), basis_ref[...],
                   preferred_element_type=jnp.float32)           # [TM, 2*F_pad]
    re = prod[:, :F_pad]
    im = prod[:, F_pad:]
    # torch.norm(view_as_real(stft), p=2, dim=-1); no epsilon in the reference.
    out_ref[...] = jnp.sqrt(re * re + im * im)


def spectrogram(x, resolution, *, frame_block=256):
    """x: [B, 1, T] -> magnitude spectrogram, time-major [B, TT, F]."""
    n_fft, hop, win_length = resolution
    B = x.shape[0]
    pad = (n_fft - hop) // 2

    xw = x[:, 0, :].astype(jnp.float32)
    xw = jnp.pad(xw, ((0, 0), (pad, pad)), mode="reflect")       # XLA glue
    L = xw.shape[1]
    TT = 1 + (L - n_fft) // hop
    F = n_fft // 2 + 1
    F_pad = _round_up(F, 128)                                    # lane-dense output

    TM = min(frame_block, _round_up(TT, 8))                      # frames per block
    n_blk = _cdiv(TT, TM)
    TT_pad = n_blk * TM
    EXTRA = (n_fft - 1) // hop
    n_rows = TT_pad + EXTRA
    need = n_rows * hop
    if need > L:
        xw = jnp.pad(xw, ((0, 0), (0, need - L)))
    else:
        xw = xw[:, :need]
    wav = xw.reshape(B, n_rows, hop)                             # hop-strided rows

    # Rectangular window of win_length, centered in n_fft, folded into the DFT
    # basis; cos / sin concatenated -> a single wide MXU matmul per block.
    lpad = (n_fft - win_length) // 2
    window = jnp.zeros((n_fft,), jnp.float32).at[lpad:lpad + win_length].set(1.0)
    n = jnp.arange(n_fft, dtype=jnp.float32)[:, None]
    f = jnp.arange(F, dtype=jnp.float32)[None, :]
    ang = 2.0 * jnp.pi * n * f / n_fft
    basis = jnp.zeros((n_fft, 2 * F_pad), jnp.float32)
    basis = basis.at[:, :F].set(jnp.cos(ang) * window[:, None])
    basis = basis.at[:, F_pad:F_pad + F].set(jnp.sin(ang) * window[:, None])
    basis = basis.astype(jnp.bfloat16)

    R = n_fft // hop
    rem = n_fft - R * hop

    kern = functools.partial(_stft_kernel, TM=TM, R=R, rem=rem,
                             EXTRA=EXTRA, F_pad=F_pad)
    flops = 2 * B * TT_pad * n_fft * 2 * F_pad
    bytes_acc = wav.size * 4 + basis.size * 2 + B * TT_pad * F_pad * 4

    mag = pl.pallas_call(
        kern,
        out_shape=jax.ShapeDtypeStruct((B, TT_pad, F_pad), jnp.float32),
        grid=(B, n_blk),
        in_specs=[
            pl.BlockSpec((None, n_rows, hop), lambda b, i: (b, 0, 0)),
            pl.BlockSpec((n_fft, 2 * F_pad), lambda b, i: (0, 0)),
        ],
        out_specs=pl.BlockSpec((None, TM, F_pad), lambda b, i: (b, i, 0)),
        compiler_params=pltpu.CompilerParams(
            dimension_semantics=("parallel", "parallel"),
            vmem_limit_bytes=_VMEM_LIMIT),
        cost_estimate=pl.CostEstimate(flops=flops,
                                      transcendentals=B * TT_pad * F_pad,
                                      bytes_accessed=bytes_acc),
    )(wav, basis)
    return mag[:, :TT, :F]                                       # [B, TT, F]


# ---------------------------------------------------------------------------
# Conv2d (+ optional leaky ReLU), time-major NHWC, im2col K-fusion on the MXU.
# ---------------------------------------------------------------------------
def _conv_im2col_kernel(x_ref, w_ref, b_ref, o_ref, *, KH, KW, SH, TH, Wo,
                        slope, act):
    """One grid step: TH output (time) rows.  All KH*KW taps of all TH rows are
    packed into one [TH*Wo, K] im2col matrix (K = KH*KW*Cin) and contracted with
    a single bf16 MXU matmul (f32 accumulation).  Time is de-interleaved into an
    even/odd parity axis by the wrapper, so every tap slab is a contiguous
    static slice (no strided indexing)."""
    i = pl.program_id(1)
    halo = (KH - 1) // SH
    start = pl.multiple_of(i * TH, TH)
    # [TH + halo, SH, Wp, Cin]: full halo window for this block of output rows.
    xs = x_ref[pl.ds(start, TH + halo), :, :, :].astype(jnp.bfloat16)
    slabs = []
    for kh in range(KH):
        base = kh // SH                                          # row offset (de-interleaved)
        par = kh % SH                                            # parity plane
        plane = xs[base:base + TH, par]                          # [TH, Wp, Cin]
        for kw in range(KW):
            slabs.append(plane[:, kw:kw + Wo, :])                # [TH, Wo, Cin]
    cols = jnp.concatenate(slabs, axis=-1)                       # [TH, Wo, K]
    # Wo is a multiple of 16 -> this collapse is layout-preserving for bf16.
    cols2d = cols.reshape(TH * Wo, KH * KW * cols.shape[-1] // (KH * KW))
    acc = jnp.dot(cols2d, w_ref[...],
                  preferred_element_type=jnp.float32)            # [TH*Wo, Cout]
    acc = acc + b_ref[...]                                       # [1, Cout] broadcast
    if act:
        acc = jnp.where(acc >= 0.0, acc, slope * acc)            # leaky_relu (f32)
    o_ref[...] = acc.astype(o_ref.dtype)                         # [TH*Wo, Cout]


def _conv_post_kernel(x_ref, w_ref, b_ref, o_ref, *, KH, KW, TH, W_out,
                      slope, act):
    """Cout == 1: weighted tap sum on the VPU (lane reduction over Cin); emits a
    lane-dense [TH, W_out(freq)] block instead of 1/128-lane masked stores."""
    i = pl.program_id(1)
    row0 = pl.multiple_of(i * TH, TH)
    xs = x_ref[pl.ds(row0, TH + KH - 1), :, :]                   # [TH+KH-1, Wp, Cin] f32
    wall = w_ref[...]                                            # [KH*KW, 1, Cin] f32
    acc = jnp.zeros((TH, W_out), jnp.float32) + b_ref[...]       # bias (1, 1) broadcast
    for kh in range(KH):
        for kw in range(KW):
            sl = xs[kh:kh + TH, kw:kw + W_out, :]                # [TH, W_out, Cin]
            wtap = wall[kh * KW + kw][None, :, :]                # [1, 1, Cin]
            acc = acc + jnp.sum(sl * wtap, axis=-1)
    if act:
        acc = jnp.where(acc >= 0.0, acc, slope * acc)
    o_ref[...] = acc


def conv2d_lrelu(x, w, b, *, stride_t, pad_t, pad_f, slope, apply_act,
                 rows_per_block=16):
    """Conv2d(+LeakyReLU) on a time-major NHWC feature map.

    x: [B, H=time, W=freq, Cin] f32
    w: [KH (time taps), KW (freq taps), Cin, Cout] f32; freq stride must be 1.
    Returns [B, H_out, W_out, Cout] f32, or [B, H_out, W_out] when Cout == 1.
    """
    B, H, W, Cin = x.shape
    KH, KW, _, Cout = w.shape
    SH = stride_t
    H_out = (H + 2 * pad_t - KH) // SH + 1
    W_out = W + 2 * pad_f - KW + 1
    K = KH * KW * Cin

    cp = pltpu.CompilerParams(dimension_semantics=("parallel", "parallel"),
                              vmem_limit_bytes=_VMEM_LIMIT)

    # TH output time rows per grid step: amortizes the ~0.35us/step pipeline
    # cost while keeping the per-step im2col inside scoped VMEM.
    TH = H_out if H_out <= rows_per_block else rows_per_block
    nHb = _cdiv(H_out, TH)
    H_out_pad = nHb * TH

    if Cout == 1:
        # conv_post path: VPU lane reduction, lane-dense freq output.
        assert SH == 1, "conv_post path assumes unit time stride"
        Wp = W + 2 * pad_f
        Hp_need = H_out_pad + KH - 1
        bot = Hp_need - (H + pad_t)
        assert bot >= 0
        xp = jnp.pad(x, ((0, 0), (pad_t, bot), (pad_f, pad_f), (0, 0)))
        wpost = w.reshape(KH * KW, Cin, 1).transpose(0, 2, 1).astype(jnp.float32)
        bpost = b.reshape(1, 1).astype(jnp.float32)
        kern = functools.partial(_conv_post_kernel, KH=KH, KW=KW, TH=TH,
                                 W_out=W_out, slope=slope, act=apply_act)
        flops = 2 * B * H_out_pad * W_out * K
        bytes_acc = xp.size * 4 + K * 4 + B * H_out_pad * W_out * 4
        y = pl.pallas_call(
            kern,
            out_shape=jax.ShapeDtypeStruct((B, H_out_pad, W_out), jnp.float32),
            grid=(B, nHb),
            in_specs=[
                pl.BlockSpec((None, Hp_need, Wp, Cin), lambda bi, i: (bi, 0, 0, 0)),
                pl.BlockSpec((KH * KW, 1, Cin), lambda bi, i: (0, 0, 0)),
                pl.BlockSpec((1, 1), lambda bi, i: (0, 0)),
            ],
            out_specs=pl.BlockSpec((None, TH, W_out), lambda bi, i: (bi, i, 0)),
            compiler_params=cp,
            cost_estimate=pl.CostEstimate(flops=flops, transcendentals=0,
                                          bytes_accessed=bytes_acc),
        )(xp, wpost, bpost)
        return y[:, :H_out]

    # --- main im2col path (Cout == 32 layers) ---
    # Freq padded to a multiple of 16 so the in-kernel [TH, Wo, K] -> [TH*Wo, K]
    # collapse is tile-aligned; padded columns are zeros -> cropped below.
    Wo = _round_up(W_out, 16)
    Wp = Wo + KW - 1
    right = Wp - (W + pad_f)
    assert right >= pad_f
    halo = _cdiv(KH - 1, SH)
    Hp = SH * (H_out_pad + halo)                                 # multiple of SH
    H2 = Hp // SH
    bot = Hp - (H + pad_t)
    assert bot >= 0

    xp = jnp.pad(x, ((0, 0), (pad_t, bot), (pad_f, right), (0, 0)))
    # Free de-interleave of the time axis into (row, parity): original padded
    # row r maps to (r // SH, r % SH).  Makes stride-SH taps contiguous slices.
    xdi = xp.reshape(B, H2, SH, Wp, Cin)

    wf = w.reshape(K, Cout).astype(jnp.bfloat16)
    bf = b.reshape(1, Cout).astype(jnp.float32)

    kern = functools.partial(_conv_im2col_kernel, KH=KH, KW=KW, SH=SH, TH=TH,
                             Wo=Wo, slope=slope, act=apply_act)
    flops = 2 * B * H_out_pad * Wo * K * Cout
    bytes_acc = xdi.size * 4 + K * Cout * 2 + B * H_out_pad * Wo * Cout * 4
    ce = pl.CostEstimate(flops=flops, transcendentals=0, bytes_accessed=bytes_acc)

    y = pl.pallas_call(
        kern,
        out_shape=jax.ShapeDtypeStruct((B, H_out_pad * Wo, Cout), jnp.float32),
        grid=(B, nHb),
        in_specs=[
            pl.BlockSpec((None, H2, SH, Wp, Cin), lambda bi, i: (bi, 0, 0, 0, 0)),
            pl.BlockSpec((K, Cout), lambda bi, i: (0, 0)),
            pl.BlockSpec((1, Cout), lambda bi, i: (0, 0)),
        ],
        out_specs=pl.BlockSpec((None, TH * Wo, Cout), lambda bi, i: (bi, i, 0)),
        compiler_params=cp, cost_estimate=ce,
    )(xdi, wf, bf)
    y = y.reshape(B, H_out_pad, Wo, Cout)                        # cheap split of dim 1
    return y[:, :H_out, :W_out, :]


# ---------------------------------------------------------------------------
# Parameters + forward (mirrors DiscriminatorR.__init__ / .forward)
# ---------------------------------------------------------------------------
# Torch-convention layer specs: kernel/stride/padding given as (freq, time).
_CONV_SPECS = [
    (1, 32, (3, 9), (1, 1), (1, 4)),
    (32, 32, (3, 9), (1, 2), (1, 4)),
    (32, 32, (3, 9), (1, 2), (1, 4)),
    (32, 32, (3, 9), (1, 2), (1, 4)),
    (32, 32, (3, 3), (1, 1), (1, 1)),
    (32, 1, (3, 3), (1, 1), (1, 1)),   # conv_post
]


def init_params(key):
    """PyTorch Conv2d default init.  Weights stored time-major as
    [Kt, Kf, Cin, Cout]; a torch weight [Cout, Cin, Kf, Kt] maps via
    w.transpose(3, 2, 1, 0).  weight_norm is an identity at init."""
    params = []
    for i, (cin, cout, (kf, kt), _, _) in enumerate(_CONV_SPECS):
        k_w, k_b = jax.random.split(jax.random.fold_in(key, i))
        fan_in = cin * kf * kt
        bound = 1.0 / jnp.sqrt(jnp.float32(fan_in))
        w = jax.random.uniform(k_w, (kt, kf, cin, cout), jnp.float32, -bound, bound)
        bb = jax.random.uniform(k_b, (cout,), jnp.float32, -bound, bound)
        params.append((w, bb))
    return params


def discriminator_r_forward(x, params, resolution, slope=LRELU_SLOPE):
    """x: [B, 1, T] -> (fmap list in torch NCHW [B, C, F, TT] layout,
    flattened conv_post output [B, F*TT])."""
    spec = spectrogram(x, resolution)                            # [B, TT, F] time-major
    h = spec[..., None]                                          # [B, TT, F, 1]

    fmap = []
    for li in range(5):
        _, _, (kf, kt), (sf, st), (pf, pt) = _CONV_SPECS[li]
        assert sf == 1
        w, b = params[li]
        h = conv2d_lrelu(h, w, b, stride_t=st, pad_t=pt, pad_f=pf,
                         slope=slope, apply_act=True)
        fmap.append(jnp.transpose(h, (0, 3, 2, 1)))              # -> [B, C, F, TT]

    _, _, _, (sf, st), (pf, pt) = _CONV_SPECS[5]
    assert sf == 1
    w, b = params[5]
    y = conv2d_lrelu(h, w, b, stride_t=st, pad_t=pt, pad_f=pf,
                     slope=slope, apply_act=False)               # [B, TT', F] (lane-dense)
    y_nchw = jnp.transpose(y, (0, 2, 1))[:, None, :, :]          # [B, 1, F, TT']
    fmap.append(y_nchw)
    out = y_nchw.reshape(y_nchw.shape[0], -1)                    # torch.flatten(x, 1, -1)
    return fmap, out


if __name__ == "__main__":
    key = jax.random.PRNGKey(0)

    # Small resolution (n_fft, hop_length, win_length) and waveform.
    resolution = (64, 16, 64)
    B, T = 2, 256
    x = jax.random.normal(jax.random.fold_in(key, 100), (B, 1, T), jnp.float32)

    params = init_params(jax.random.fold_in(key, 200))

    fmap, out = discriminator_r_forward(x, params, resolution)
    out = jax.block_until_ready(out)
    for fm in fmap:
        jax.block_until_ready(fm)

    # Shapes implied by the module:
    #   spectrogram -> [2, 33, 16] (torch [B, F, TT]); conv stack -> [2, 1, 33, 2];
    #   flatten -> [2, 66].
    assert out.shape == (2, 66), out.shape
    assert fmap[0].shape == (2, 32, 33, 16), fmap[0].shape
    assert fmap[1].shape == (2, 32, 33, 8), fmap[1].shape
    assert fmap[-1].shape == (2, 1, 33, 2), fmap[-1].shape
    assert bool(jnp.all(jnp.isfinite(out)))
    print("KERNEL_OK")
</pallas_src>

<mosaic_0001>
module attributes {stable_mosaic.version = 11 : i64} {
  func.func @_stft_kernel(%arg0: i32, %arg1: i32, %arg2: memref<1x19x16xf32, #tpu.memory_space<vmem>>, %arg3: memref<64x256xbf16, #tpu.memory_space<vmem>>, %arg4: memref<1x16x128xf32, #tpu.memory_space<vmem>>) attributes {dimension_semantics = [#tpu.dimension_semantics<parallel>, #tpu.dimension_semantics<parallel>], iteration_bounds = array<i64: 2, 1>, scalar_prefetch = 0 : i64, scratch_operands = 0 : i64, tpu.core_type = #tpu.core_type<tc>, window_params = [{transform_indices = @transform_0, window_bounds = array<i64: 1, 19, 16>}, {pipeline_mode = #tpu.pipeline_mode<synchronous>, transform_indices = @transform_1, window_bounds = array<i64: 64, 256>}, {transform_indices = @transform_2, window_bounds = array<i64: 1, 16, 128>}]} {
    %c16_i32 = arith.constant 16 : i32
    %0 = arith.muli %arg1, %c16_i32 : i32
    %1 = tpu.assume_multiple %0, 16 : i32
    %c0 = arith.constant 0 : index
    %2 = arith.index_cast %1 : i32 to index
    %c0_0 = arith.constant 0 : index
    %3 = vector.load %arg2[%c0, %2, %c0_0] : memref<1x19x16xf32, #tpu.memory_space<vmem>>, vector<1x19x16xf32>
    %4 = vector.shape_cast %3 : vector<1x19x16xf32> to vector<19x16xf32>
    %5 = vector.extract_strided_slice %4 {offsets = [0, 0], sizes = [16, 16], strides = [1, 1]} : vector<19x16xf32> to vector<16x16xf32>
    %6 = vector.extract_strided_slice %4 {offsets = [1, 0], sizes = [16, 16], strides = [1, 1]} : vector<19x16xf32> to vector<16x16xf32>
    %7 = vector.extract_strided_slice %4 {offsets = [2, 0], sizes = [16, 16], strides = [1, 1]} : vector<19x16xf32> to vector<16x16xf32>
    %8 = vector.extract_strided_slice %4 {offsets = [3, 0], sizes = [16, 16], strides = [1, 1]} : vector<19x16xf32> to vector<16x16xf32>
    %9 = tpu.concatenate %5, %6, %7, %8 in 1 : vector<16x16xf32>, vector<16x16xf32>, vector<16x16xf32>, vector<16x16xf32> -> vector<16x64xf32>
    %10 = arith.truncf %9 : vector<16x64xf32> to vector<16x64xbf16>
    %c0_1 = arith.constant 0 : index
    %c0_2 = arith.constant 0 : index
    %11 = vector.load %arg3[%c0_1, %c0_2] : memref<64x256xbf16, #tpu.memory_space<vmem>>, vector<64x256xbf16>
    %cst = arith.constant dense<0.000000e+00> : vector<16x256xf32>
    %12 = tpu.matmul %10, %11, %cst {dimension_numbers = #tpu.dot_dimension_numbers<[1], [0], [0], [1], [0, 0, 1, 1], [], []>} : vector<16x64xbf16>, vector<64x256xbf16>, vector<16x256xf32> -> vector<16x256xf32>
    %13 = vector.extract_strided_slice %12 {offsets = [0, 0], sizes = [16, 128], strides = [1, 1]} : vector<16x256xf32> to vector<16x128xf32>
    %14 = vector.extract_strided_slice %12 {offsets = [0, 128], sizes = [16, 128], strides = [1, 1]} : vector<16x256xf32> to vector<16x128xf32>
    %15 = arith.mulf %13, %13 : vector<16x128xf32>
    %16 = arith.mulf %14, %14 : vector<16x128xf32>
    %17 = arith.addf %15, %16 : vector<16x128xf32>
    %18 = math.sqrt %17 : vector<16x128xf32>
    %c0_3 = arith.constant 0 : index
    %c0_4 = arith.constant 0 : index
    %c0_5 = arith.constant 0 : index
    %19 = vector.load %arg4[%c0_3, %c0_4, %c0_5] : memref<1x16x128xf32, #tpu.memory_space<vmem>>, vector<1x16x128xf32>
    %20 = vector.shape_cast %19 : vector<1x16x128xf32> to vector<16x128xf32>
    %21 = vector.shape_cast %18 : vector<16x128xf32> to vector<1x16x128xf32>
    tpu.vector_store %arg4[%c0_3, %c0_4, %c0_5], %21 {strides = array<i32>} : memref<1x16x128xf32, #tpu.memory_space<vmem>>, vector<1x16x128xf32>,
    return
  }
  func.func @transform_0(%arg0: i32, %arg1: i32) -> (i32, i32, i32) {
    %c0_i32 = arith.constant 0 : i32
    %c0_i32_0 = arith.constant 0 : i32
    %c0_i32_1 = arith.constant 0 : i32
    return %arg0, %c0_i32, %c0_i32_0 : i32, i32, i32
  }
  func.func @transform_1(%arg0: i32, %arg1: i32) -> (i32, i32) {
    %c0_i32 = arith.constant 0 : i32
    %c0_i32_0 = arith.constant 0 : i32
    %c0_i32_1 = arith.constant 0 : i32
    return %c0_i32, %c0_i32_0 : i32, i32
  }
  func.func @transform_2(%arg0: i32, %arg1: i32) -> (i32, i32, i32) {
    %c0_i32 = arith.constant 0 : i32
    %c0_i32_0 = arith.constant 0 : i32
    return %arg0, %arg1, %c0_i32 : i32, i32, i32
  }
}

</mosaic_0001>

<bundles_post_ra>
// kernel: tpu_custom_call.1
= control target key start
LH: loop header
LB: loop body
LE: loop exit
PB: predicated region body
PF: predicated region fallthrough
CT: control target
= control target key end

     0   :  { %7 = vsyncpa [#allocation3], 0  ;;  %s779_s0 = inlined_call_operand.vmem [shape: f32[2,19,16], index: 0, kind: input, shape index: {}]   ;;  %s780_s1 = inlined_call_operand.vmem [shape: bf16[64,256], index: 1, kind: input, shape index: {}]   ;;  %s781_s2 = inlined_call_operand.hbm [shape: f32[2,16,128], index: 2, kind: output, shape index: {}]  }
   0x1   :  { %9 = vsyncpa [#allocation3 + $0x1], 0  ;;  %s635_s9 = smov 0   ;;  %s637_s10 = smov 0  }
   0x2   :  { %s639_s11 = smov 0   ;;  %s641_s12 = smov 0  }
   0x3   :  { %s643_s13 = smov 0   ;;  %s645_s14 = smov 0  }
   0x4 LB: > { %s420_s15 = sadd.s32 4294967295, %s611_s14   ;;  %s421_s16 = sadd.s32 4294967294, %s611_s14   ;;  %s611_s14 = sphi %s645_s14, %s15_s14   ;;  %s607_s13 = sphi %s643_s13, %s788_s13   ;;  %s603_s12 = sphi %s641_s12, %s787_s12   ;;  %s599_s11 = sphi %s639_s11, %s786_s11   ;;  %s595_s10 = sphi %s637_s10, %s785_s10   ;;  %s591_s9 = sphi %s635_s9, %s784_s9  }
   0x5   : > { %s27_s17 = sadd.s32 1, %s607_s13  ;;  %s83_s18 = sadd.s32 1, %s599_s11 }
   0x6   : > { %p29_p0 = scmp.ge.s32.totalorder %s27_s17, 2  ;;  %p93_p1 = scmp.ne.s32.totalorder %s599_s11, %s595_s10 }
   0x7   : > { %p94_p2 = scmp.eq.s32.totalorder %s420_s15, 1  ;;  %p99_p3 = scmp.ne.s32.totalorder %s595_s10, %s591_s9 }
   0x8   : > { %s790_s17 = smov (%p29_p0, %s27_s17), 0  ;;  %p100_p5 = scmp.eq.s32.totalorder %s421_s16, 1 }
   0x9   : > { %p675_p4 = por %p94_p2, %p93_p1  ;;  %s78_s20 = ssub.s32 %s607_s13, %s790_s17 }
   0xa   : > { %p424_p6 = scmp.ge.s32.totalorder %s611_s14, 1  ;;  %p81_p7 = scmp.eq.s32.totalorder %s78_s20, 0 }
   0xb   : > { %p682_p8 = por %p100_p5, %p99_p3  ;;  %p129_p9 = scmp.lt.s32.totalorder %s611_s14, 3 }
   0xc   : > { %s688_s22 = scalar_select %p81_p7, %s599_s11, %s83_s18  }
   0xd   : > { %p130_p10 = pnand %p424_p6, %p129_p9 }
   0xe   : > { %p151_p11 = scmp.lt.s32.totalorder (!%p130_p10), %s603_s12, 1  ;;  %s614_s26 = smov (!%p130_p10), 16  }
   0xf   : > { %133 = sbr.rel (%p130_p10) target bundleno = 391 (0x187), region = 28  ;;  %s615_s27 = smov (!%p130_p10), 48  }
  0x10   : > { %s616_s28 = smov (!%p130_p10), 32   ;;  %s148_s29 = sand.u32 (!%p130_p10), 1, %s595_s10  }
  0x11   : > { %s441_s3 = sshll.u32 (!%p130_p10), %s603_s12, 8  ;;  %s617_s16 = smov (!%p130_p10), [#allocation2]  }
  0x12   : > { %s730_s8 = scalar_lea.hbm (!%p130_p10), %s781_s2, %s441_s3  ;;  %s539_s18 = sshll.u32 (!%p130_p10), %s617_s16, 4  ;;  %s540_s18 = int_to_ptr.vmem [resolvable:$false] %s539_s18 }
  0x13   : > { %s541_s20 = scalar_lea.vmem (!%p130_p10), %s540_s18, 512 }
  0x14   : > { %v519_v0 = vld [vmem:[%s780_s1 + $0x34] ss:$8 sps:$4 sm:$0xff]   ;;  %s152_s25 = scalar_select %p151_p11, %s603_s12, 1  ;;  %v521_v1 = vld [vmem:[%s780_s1 + $0x30] ss:$8 sps:$4 sm:$0xff]   ;;  %vm166_vm0 = vcmask 1046528  }
  0x15   : > { %v522_v2 = vld [vmem:[%s780_s1 + $0x24] ss:$8 sps:$4 sm:$0xff]   ;;  %272 = vmatprep.subr.bf16.mxu0 %v519_v0  ;;  %v524_v3 = vld [vmem:[%s780_s1 + $0x20] ss:$8 sps:$4 sm:$0xff]   ;;  %v525_v4 = vld [vmem:[%s780_s1 + $0x14] ss:$8 sps:$4 sm:$0xff]  }
  0x16   : > { %s442_s30 = smul.u32 24, %s152_s25  ;;  %273 = vmatpush1.bf16.msra.mxu0 %v521_v1  ;;  %vm178_vm1 = vcmask 1045504   ;;  %vm190_vm2 = vcmask 1044480   ;;  %v527_v12 = vld [vmem:[%s780_s1 + $0x10] ss:$8 sps:$4 sm:$0xff]   ;;  %v613_v25 = vmov 0  }
  0x17   : > { %274 = vmatprep.subr.bf16.mxu0 %v522_v2  ;;  %v528_v17 = vld [vmem:[%s780_s1 + $0x4] ss:$8 sps:$4 sm:$0xff]   ;;  %296 = vmatprep.mubr.bf16.mxu0 %v613_v25  ;;  %v530_v27 = vld [vmem:[%s780_s1] ss:$8 sps:$4 sm:$0xff]   ;;  %vm202_vm3 = vcmask 130048   ;;  %vm205_vm4 = vcmask 261120  }
  0x18   : > { %s155_s15 = scalar_lea.vmem %s779_s0, %s442_s30  ;;  %vm208_vm5 = vcmask 392192   ;;  %vm260_vm6 = vcmask 523264   ;;  %s425_s30 = sshll.u32 %s148_s29, 4 }
  0x19   : > { %v160_v5 = vld [vmem:[%s155_s15] sm:$0xff]  ;;  %v161_v6 = vld [vmem:[%s155_s15 + $0x8] sm:$0xff]  ;;  %v162_v7 = vld [vmem:[%s155_s15 + $0x10] sm:$0x7]  ;;  %s150_s4 = scalar_lea.vmem [#allocation2], %s425_s30  ;;  %s734_s12 = scalar_lea.sflag [#allocation3], %s148_s29 }
  0x1a   : > { %v167_v8 = vrot.slane %v160_v5, 1  ;;  %v168_v9 = vrot.slane %v161_v6, 1  ;;  %v170_v10 = vrot.slane %v162_v7, 1  ;;  %v179_v11 = vrot.slane %v160_v5, 2  ;;  %275 = vmatpush1.bf16.msra.mxu0 %v524_v3  ;;  %s345_s5 = sshll.u32 %s150_s4, 4  ;;  %s732_s5 = int_to_ptr.vmem [resolvable:$true] %s345_s5 }
  0x1b   : > { %v180_v13 = vrot.slane %v161_v6, 2  ;;  %v182_v14 = vrot.slane %v162_v7, 2  ;;  %v191_v15 = vrot.slane %v160_v5, 3  ;;  %v192_v16 = vrot.slane %v161_v6, 3  ;;  %276 = vmatprep.subr.bf16.mxu0 %v525_v4  ;;  %s535_s15 = scalar_lea.vmem %s732_s5, 256  ;;  %p542_p1 = scmp.lt.s32.totalorder %s732_s5, %s540_s18 }
  0x1c   : > { %v169_v18 = vsel %vm166_vm0, %v167_v8, %v168_v9  ;;  %v171_v19 = vsel %vm166_vm0, %v168_v9, %v170_v10  ;;  %v194_v20 = vrot.slane %v162_v7, 3  ;;  %p536_p12 = scmp.ne.s32.totalorder %s732_s5, %s535_s15  ;;  %p543_p2 = scmp.lt.s32.totalorder %s541_s20, %s535_s15 }
  0x1d   : > { %v504_v21 = vpack.i.bf16 %v171_v19, %v169_v18  ;;  %v181_v22 = vsel %vm178_vm1, %v179_v11, %v180_v13  ;;  %v183_v23 = vsel %vm178_vm1, %v180_v13, %v182_v14  ;;  %v193_v24 = vsel %vm190_vm2, %v191_v15, %v192_v16 }
  0x1e   : > { %v195_v26 = vsel %vm190_vm2, %v192_v16, %v194_v20  ;;  %277 = vmatpush1.bf16.msra.mxu0 %v527_v12  ;;  %v509_v28 = vpack.i.bf16 %v183_v23, %v181_v22  ;;  %p537_p13 = pnand %p536_p12, %p675_p4  ;;  %p544_p3 = por %p543_p2, %p542_p1 }
  0x1f   : > { %505 = vrot.lane.b32.xlu0 %v504_v21, %s614_s26  ;;  %v514_v29 = vpack.i.bf16 %v195_v26, %v193_v24  ;;  %278 = vmatprep.subr.bf16.mxu0 %v528_v17 }
  0x20   : > { %p538_p0 = pneg %p537_p13 }
  0x21   : > { %515 = vrot.lane.b32.xlu1 %v514_v29, %s615_s27 }
  0x22   : > { %279 = vmatpush1.bf16.msra.mxu0 %v530_v27  ;;  %p545_p5 = pnand %p544_p3, %p538_p0 }
  0x23   : > { %510 = vrot.lane.b32.xlu0 %v509_v28, %s616_s28 }
  0x91   : > { %v506_v30 = vpop.permute.xlu0 %505 }
  0x92   : > { %v508_v31 = vunpack.i.h.bf16 %v506_v30  ;;  %v507_v32 = vunpack.i.l.bf16 %v506_v30 }
  0x93   : > { %v516_v33 = vpop.permute.xlu1 %515 }
  0x94   : > { %v518_v35 = vunpack.i.h.bf16 %v516_v33  ;;  %v517_v36 = vunpack.i.l.bf16 %v516_v33  ;;  %v204_v39 = vsel %vm202_vm3, %v161_v6, %v508_v31  ;;  %v203_v40 = vsel %vm202_vm3, %v160_v5, %v507_v32 }
  0x95   : > { %v511_v34 = vpop.permute.xlu0 %510 }
  0x96   : > { %v513_v37 = vunpack.i.h.bf16 %v511_v34  ;;  %v512_v38 = vunpack.i.l.bf16 %v511_v34 }
  0x98   : > { %v206_v41 = vsel %vm205_vm4, %v203_v40, %v512_v38  ;;  %v207_v42 = vsel %vm205_vm4, %v204_v39, %v513_v37 }
  0x99   : > { %v209_v43 = vsel %vm208_vm5, %v206_v41, %v517_v36  ;;  %v210_v44 = vsel %vm208_vm5, %v207_v42, %v518_v35 }
  0x9a   : > { %v211_v45 = vpack.c.bf16 %v210_v44, %v209_v43 }
  0x9c   : > { %435 = vmatmul.mubr.msk.bf16.vlgmr.msra.gmra.mxu0 %vm260_vm6, %v211_v45 }
 0x15c   : > { %v298_v46 = vpop.f32.mrf.mxu0 }
 0x15d   : > { %v307_v48 = vmul.f32 %v298_v46, %v298_v46 }
 0x15e   : > { %v300_v47 = vpop.f32.mrf.mxu0 }
 0x15f   : > { %v309_v49 = vmul.f32 %v300_v47, %v300_v47 }
 0x160   : > { %v302_v50 = vpop.f32.mrf.mxu0 }
 0x161   : > { %v311_v51 = vadd.f32 %v309_v49, %v307_v48  ;;  %v308_v53 = vmul.f32 %v302_v50, %v302_v50 }
 0x162   : > { %v304_v52 = vpop.f32.mrf.mxu0 }
 0x163   : > { %531 = vrsqrt.f32 %v311_v51  ;;  %v310_v54 = vmul.f32 %v304_v52, %v304_v52  ;;  %vm315_vm7 = vcmp.eq.f32.partialorder %v311_v51, inf  ;;  %v318_v58 = vand.u32 2147483648, %v311_v51 }
 0x164   : > { %vm317_vm8 = vcmp.eq.f32.partialorder %v311_v51, 0.0 }
 0x165   : > { %v312_v55 = vadd.f32 %v310_v54, %v308_v53 }
 0x167   : > { %533 = vrsqrt.f32 %v312_v55  ;;  %vm322_vm9 = vcmp.eq.f32.partialorder %v312_v55, inf  ;;  %v325_v63 = vand.u32 2147483648, %v312_v55  ;;  %vm324_vm10 = vcmp.eq.f32.partialorder %v312_v55, 0.0 }
 0x170   : > { %v532_v56 = vpop.eup %531 }
 0x171   : > { %v314_v57 = vmul.f32 %v532_v56, %v311_v51 }
 0x173   : > { %v316_v59 = vsel %vm315_vm7, %v311_v51, %v314_v57 }
 0x174   : > { %v534_v60 = vpop.eup %533  ;;  %v319_v61 = vsel %vm317_vm8, %v318_v58, %v316_v59 }
 0x175   : > { %v321_v62 = vmul.f32 %v534_v60, %v312_v55  ;;  %327 = vst [vmem:[%s150_s4] sm:$0xff] %v319_v61 }
 0x177   : > { %v323_v0 = vsel %vm322_vm9, %v312_v55, %v321_v62 }
 0x178   : > { %v326_v1 = vsel %vm324_vm10, %v325_v63, %v323_v0 }
 0x179   : > { %328 = vst [vmem:[%s150_s4 + $0x8] sm:$0xff] %v326_v1 }
 0x17a   : > { %548 = shalt.err (!%p545_p5)
}
 0x17b   : > { %s549_s23 = scalar_lea.hbm %s730_s8, 256  ;;  %s553_s26 = scalar_lea.hbm %s781_s2, 512 }
 0x17c   : > { %p550_p6 = scmp.ne.s32.totalorder %s730_s8, %s549_s23  ;;  %p554_p10 = scmp.lt.s32.totalorder %s730_s8, %s781_s2 }
 0x17d   : > { %p555_p11 = scmp.lt.s32.totalorder %s553_s26, %s549_s23 }
 0x17e   : > { %p551_p7 = pnand %p550_p6, %p675_p4 }
 0x17f   : > { %p556_p12 = por %p555_p11, %p554_p10 }
 0x180   : > { %p552_p9 = pneg %p551_p7 }
 0x182   : > { %p557_p13 = pnand %p556_p12, %p552_p9 }
 0x184   : > { %560 = shalt.err (!%p557_p13)
}
 0x185   : > { %s618_s29 = smov 128   ;;  %s619_s30 = smov 8  }
 0x186   : > { %443 = dma.vmem_to_hbm [thread:$0]  (%p675_p4), %s732_s5, 256, %s730_s8, %s734_s12, %s618_s29, %s618_s29, %s619_s30  }
 0x187 PF: > { %p449_p0 = scmp.ge.s32.totalorder %s611_s14, 2  ;;  %s360_s3 = sand.u32 1, %s591_s9  }
 0x188   : > { %s361_s4 = scalar_lea.sflag [#allocation3], %s360_s3 }
 0x189   : > { %p446_p1 = pnand %p449_p0, %p682_p8 }
 0x18b   : > { %p447_p2 = pneg %p446_p1 }
 0x18d   : > { %586 = dma.done.wait (%p447_p2), %s361_s4, 256  }
 0x18e   : > { %588 = vsyncadd (%p447_p2), %s361_s4, 4294967040  ;;  %s15_s14 = sadd.s32 1, %s611_s14   ;;  %s784_s9 = smov %s595_s10 }
 0x18f   : > { %p12_p3 = scmp.ge.s32.totalorder %s15_s14, 4   ;;  %s785_s10 = smov %s599_s11 }
 0x190   : > { %s786_s11 = smov %s688_s22  ;;  %s787_s12 = smov %s607_s13 }
 0x191   : > { %s788_s13 = smov %s790_s17  ;;  %14 = sbr.rel (!%p12_p3) target bundleno = 4 (0x4), region = 64 }
 0x196   :  { %366 = vsyncpa [#allocation3], 1 }
 0x197   :  { %368 = vsyncpa [#allocation3 + $0x1], 1 }

</bundles_post_ra>
